<compile_context>
chip_gen: v6e
topology: v6e:2x2x1
jax: 0.10.0
libtpu: 0.0.40
codegen_flags: <defaults>
</compile_context>

<pallas_src>
import math
from functools import partial

import jax
import jax.numpy as jnp
from jax.experimental import pallas as pl
from jax.experimental.pallas import tpu as pltpu


def _tap(xw, k, tl, stride):
    """k-th kernel-tap window of the (C_in, W) input window -> (C_in, TL)."""
    if stride == 1:
        return xw[:, k:k + tl]                         # static lane offset
    # TODO(synk): stride > 1 uses a lane-strided slice (correct but slow);
    # only the single-tile path takes this branch and it is not exercised below.
    return jax.lax.slice_in_dim(xw, k, k + (tl - 1) * stride + 1,
                                stride=stride, axis=1)


def _self_onn_kernel(x_ref, w_ref, opw_ref, o_ref, *, K, stride, n_l_tiles):
    """Fused conv (im2col-in-VMEM, one matmul) + operator bank + weighted mix.

    x_ref   : (TB, C_in, L_pad)          padded input rows for this batch block
    w_ref   : (Q_eff*C_out, K*C_in)      weights, Q fused into M, K fused into the contraction
    opw_ref : (Q_eff, C_out, 1)          softmax(operator_probs) per channel (f32)
    o_ref   : (TB, C_out, TL)            output tile (lane-dense along L, NCW layout)
    """
    TB = x_ref.shape[0]
    C_out, TL = o_ref.shape[1], o_ref.shape[2]
    Q_eff = opw_ref.shape[0]
    W = (TL - 1) * stride + K                          # input window for one tile

    if n_l_tiles > 1:                                  # stride == 1 on this path
        base = pl.multiple_of(pl.program_id(1) * TL, 128)
    else:
        base = 0

    w_fused = w_ref[...]                               # fetched once per grid step
    opws = [opw_ref[qi] for qi in range(Q_eff)]        # (C_out, 1) each, hoisted

    for b in range(TB):                                # static unroll over batch rows
        # Windowed load + clamp: only the elements this tile needs (padded
        # zeros clamp to zero, matching torch pad-after-clamp semantics).
        xw = jnp.clip(x_ref[b, :, pl.ds(base, W)], -3.0, 3.0)        # (C_in, W)

        # In-VMEM unfold: contraction dim K*C_in -> single wide matmul.
        taps = [_tap(xw, k, TL, stride) for k in range(K)]           # K x (C_in, TL)
        x_unf = jnp.concatenate(taps, axis=0) if K > 1 else taps[0]  # (K*C_in, TL)

        r = jnp.dot(w_fused, x_unf, preferred_element_type=jnp.float32)
        r = jnp.clip(r, -8.0, 8.0)                     # (Q_eff*C_out, TL)

        # Operator bank + softmax-weighted sum (ops >= 5 contribute 0, as torch).
        # (v5e note: sin/cos/tanh/exp share the single EUP slot; if a bundle
        #  dump shows EUP saturation, tanh can be moved to a VPU polynomial.)
        acc = None
        for qi in range(Q_eff):
            rq = r[qi * C_out:(qi + 1) * C_out, :]     # (C_out, TL), static slice
            if qi == 0:
                op = rq
            elif qi == 1:
                op = jnp.sin(rq)
            elif qi == 2:
                op = jnp.cos(rq)
            elif qi == 3:
                op = jnp.tanh(rq)
            elif qi == 4:
                op = jnp.exp(jnp.clip(rq, -5.0, 5.0))
            else:
                continue
            term = op * opws[qi]                       # (C_out,1) lane-broadcast
            acc = term if acc is None else acc + term
        o_ref[b] = jnp.clip(acc, -5.0, 5.0).astype(o_ref.dtype)


def _pick_tiles(B, C_out, L_out, Q_eff, stride):
    """Tile sizes budgeted by the vreg live set (r + acc must not spill)."""
    budget_bytes = 160 * 1024                           # stay well under the 256 KiB vreg file
    cap = budget_bytes // max(1, (Q_eff + 1) * C_out * 4)
    cap = max(128, min(2048, (cap // 128) * 128))       # lane-dense multiple of 128
    if stride != 1 or L_out <= cap:
        # TODO(synk): a huge L_out with stride > 1 keeps a single (spill-prone)
        # tile; tiling the strided path is not implemented.
        tl, nlt = L_out, 1
    else:
        tl = cap
        nlt = pl.cdiv(L_out, tl)                        # remainder handled by pad+slice
    # Batch tile: amortize per-grid-step overhead on short sequences.
    tb = 1
    if L_out <= 256:
        for cand in (8, 4, 2):
            if B % cand == 0:
                tb = cand
                break
    return tb, tl, nlt


def optimized_conv1d_self_onn(x, conv_weights, operator_probs, *,
                              stride=1, padding=0, groups=1,
                              use_bf16_mxu=False):
    """x: (B, C_in, L).  Returns (B, C_out, L_out) in NCW layout (like torch)."""
    if groups != 1:
        # TODO(synk): grouped conv1d not implemented in this kernel.
        raise NotImplementedError("groups != 1 is not supported")

    B, C_in, L = x.shape
    C_out, C_in_g, K, Q = conv_weights.shape
    assert C_in_g == C_in and Q >= 1
    L_out = (L + 2 * padding - K) // stride + 1
    Q_eff = min(Q, 5)            # torch defines operators 0..4; the rest contribute 0

    compute_dtype = jnp.bfloat16 if use_bf16_mxu else x.dtype

    TB, TL, NLT = _pick_tiles(B, C_out, L_out, Q_eff, stride)
    L_out_pad = NLT * TL
    extra = (L_out_pad - L_out) * stride                 # right pad so every tile window is in-bounds
    L_pad_total = L + 2 * padding + extra

    # Only a zero-pad along L (1x HBM traffic) -- no im2col, no transposes.
    x_pad = jnp.pad(x, ((0, 0), (0, 0), (padding, padding + extra))).astype(compute_dtype)

    # (C_out, C_in, K, Q) -> (Q_eff*C_out, K*C_in):
    #   Q fused into the matmul M dim, K fused into the contraction dim.
    w_mat = jnp.transpose(conv_weights[:, :, :, :Q_eff], (3, 0, 2, 1))
    w_mat = w_mat.reshape(Q_eff * C_out, K * C_in).astype(compute_dtype)

    # softmax over the full operator dim (matches torch), kept f32 for the mix.
    opw = jax.nn.softmax(operator_probs.astype(jnp.float32), axis=1)   # (C_out, Q)
    opw_k = jnp.transpose(opw[:, :Q_eff], (1, 0))[:, :, None]          # (Q_eff, C_out, 1)

    # VMEM budget from the actual (double-buffered) blocks, clamped to a range
    # that is safe on v5e/v6e (128 MiB) and v7x (64 MiB).
    itm_x = jnp.dtype(compute_dtype).itemsize
    itm_o = jnp.dtype(x.dtype).itemsize
    blk_bytes = (TB * C_in * L_pad_total * itm_x
                 + TB * C_out * TL * itm_o
                 + w_mat.size * itm_x
                 + opw_k.size * 4)
    vmem_limit = int(min(max(2 * blk_bytes + (8 << 20), 32 << 20), 100 << 20))

    flops = 2 * B * L_out * (Q_eff * C_out) * (C_in * K)
    transcendentals = B * L_out * C_out * max(0, Q_eff - 1)
    bytes_accessed = int(x_pad.size * itm_x + w_mat.size * itm_x
                         + opw_k.size * 4 + B * C_out * L_out * itm_o)

    grid_spec = pl.GridSpec(
        grid=(B // TB, NLT),
        in_specs=[
            # Full padded rows for this batch block; constant in the L-tile
            # axis -> fetched once per batch block (in-kernel windowing
            # replaces HBM im2col).
            # TODO(synk): for very large C_in*L on v7x (64 MiB VMEM) this
            # should become a haloed L-tile (manual make_async_copy window).
            pl.BlockSpec((TB, C_in, L_pad_total), lambda b, i: (b, 0, 0)),
            # Tiny weight / operator tensors: constant index maps, no refetch.
            pl.BlockSpec((Q_eff * C_out, K * C_in), lambda b, i: (0, 0)),
            pl.BlockSpec((Q_eff, C_out, 1), lambda b, i: (0, 0, 0)),
        ],
        out_specs=pl.BlockSpec((TB, C_out, TL), lambda b, i: (b, 0, i)),
    )

    out = pl.pallas_call(
        partial(_self_onn_kernel, K=K, stride=stride, n_l_tiles=NLT),
        out_shape=jax.ShapeDtypeStruct((B, C_out, L_out_pad), x.dtype),
        grid_spec=grid_spec,
        compiler_params=pltpu.CompilerParams(
            dimension_semantics=("parallel", "parallel"),
            vmem_limit_bytes=vmem_limit,
        ),
        cost_estimate=pl.CostEstimate(
            flops=flops, transcendentals=transcendentals,
            bytes_accessed=bytes_accessed),
    )(x_pad, w_mat, opw_k)

    if L_out_pad != L_out:
        out = out[:, :, :L_out]
    return out                    # already (B, C_out, L_out) in NCW layout


def _reference_forward(x, conv_weights, operator_probs, *, stride, padding):
    """Pure-JAX reference mirroring the PyTorch module."""
    C_out, C_in, K, Q = conv_weights.shape
    xc = jnp.clip(x, -3.0, 3.0)
    x_pad = jnp.pad(xc, ((0, 0), (0, 0), (padding, padding)))
    ops = []
    for qi in range(Q):
        w = conv_weights[:, :, :, qi]                  # (C_out, C_in, K)
        co = jax.lax.conv_general_dilated(
            x_pad, w, window_strides=(stride,), padding='VALID',
            dimension_numbers=('NCH', 'OIH', 'NCH'))
        co = jnp.clip(co, -8.0, 8.0)
        if qi == 0:
            op = co
        elif qi == 1:
            op = jnp.sin(co)
        elif qi == 2:
            op = jnp.cos(co)
        elif qi == 3:
            op = jnp.tanh(co)
        elif qi == 4:
            op = jnp.exp(jnp.clip(co, -5.0, 5.0))
        else:
            op = jnp.zeros_like(co)
        ops.append(op)
    outputs = jnp.stack(ops, axis=-1)                  # (B, C_out, L_out, Q)
    opw = jax.nn.softmax(operator_probs, axis=1)       # (C_out, Q)
    final = jnp.einsum('bcto,co->bct', outputs, opw)
    return jnp.clip(final, -5.0, 5.0)


def _run_case(key, *, B, C_in, L, C_out, K, Q, stride, padding):
    k_w, k_x = jax.random.split(key)
    # Deterministic parameter init matching _initialize_weights_stable()
    fan_in = C_in * K
    std = math.sqrt(1.0 / fan_in)
    conv_weights = (std * 0.3) * jax.random.normal(
        k_w, (C_out, C_in, K, Q), dtype=jnp.float32)
    operator_probs = jnp.full((C_out, Q), 0.1, dtype=jnp.float32).at[:, 0].set(0.3)
    x = jax.random.normal(k_x, (B, C_in, L), dtype=jnp.float32)

    y = optimized_conv1d_self_onn(
        x, conv_weights, operator_probs, stride=stride, padding=padding)
    y = jax.block_until_ready(y)

    y_ref = _reference_forward(
        x, conv_weights, operator_probs, stride=stride, padding=padding)
    L_out = (L + 2 * padding - K) // stride + 1
    assert y.shape == (B, C_out, L_out), (y.shape, (B, C_out, L_out))
    err = float(jnp.max(jnp.abs(y - y_ref)))
    assert jnp.allclose(y, y_ref, atol=2e-5, rtol=2e-5), err


if __name__ == "__main__":
    root = jax.random.PRNGKey(0)
    k1, k2 = jax.random.split(root)
    # Small case matching the torch module defaults (single L tile, batch-tiled step).
    _run_case(k1, B=2, C_in=4, L=16, C_out=8, K=3, Q=5, stride=1, padding=1)
    # Longer signal exercising the L-tiled path (128-multiple TL, padded/sliced remainder).
    _run_case(k2, B=2, C_in=4, L=1200, C_out=8, K=3, Q=5, stride=1, padding=1)
    print("KERNEL_OK")
</pallas_src>

<mosaic_0001>
module attributes {stable_mosaic.version = 11 : i64} {
  func.func @_self_onn_kernel(%arg0: i32, %arg1: i32, %arg2: memref<2x4x18xf32, #tpu.memory_space<vmem>>, %arg3: memref<40x12xf32, #tpu.memory_space<vmem>>, %arg4: memref<5x8x1xf32, #tpu.memory_space<vmem>>, %arg5: memref<2x8x16xf32, #tpu.memory_space<vmem>>) attributes {dimension_semantics = [#tpu.dimension_semantics<parallel>, #tpu.dimension_semantics<parallel>], iteration_bounds = array<i64: 1, 1>, scalar_prefetch = 0 : i64, scratch_operands = 0 : i64, tpu.core_type = #tpu.core_type<tc>, window_params = [{transform_indices = @transform_0, window_bounds = array<i64: 2, 4, 18>}, {pipeline_mode = #tpu.pipeline_mode<synchronous>, transform_indices = @transform_1, window_bounds = array<i64: 40, 12>}, {pipeline_mode = #tpu.pipeline_mode<synchronous>, transform_indices = @transform_2, window_bounds = array<i64: 5, 8, 1>}, {transform_indices = @transform_3, window_bounds = array<i64: 2, 8, 16>}]} {
    %c0 = arith.constant 0 : index
    %c0_0 = arith.constant 0 : index
    %0 = vector.load %arg3[%c0, %c0_0] : memref<40x12xf32, #tpu.memory_space<vmem>>, vector<40x12xf32>
    %c0_1 = arith.constant 0 : index
    %c0_2 = arith.constant 0 : index
    %c0_3 = arith.constant 0 : index
    %1 = vector.load %arg4[%c0_1, %c0_2, %c0_3] : memref<5x8x1xf32, #tpu.memory_space<vmem>>, vector<1x8x1xf32>
    %2 = vector.shape_cast %1 : vector<1x8x1xf32> to vector<8x1xf32>
    %c1 = arith.constant 1 : index
    %c0_4 = arith.constant 0 : index
    %c0_5 = arith.constant 0 : index
    %3 = vector.load %arg4[%c1, %c0_4, %c0_5] : memref<5x8x1xf32, #tpu.memory_space<vmem>>, vector<1x8x1xf32>
    %4 = vector.shape_cast %3 : vector<1x8x1xf32> to vector<8x1xf32>
    %c2 = arith.constant 2 : index
    %c0_6 = arith.constant 0 : index
    %c0_7 = arith.constant 0 : index
    %5 = vector.load %arg4[%c2, %c0_6, %c0_7] : memref<5x8x1xf32, #tpu.memory_space<vmem>>, vector<1x8x1xf32>
    %6 = vector.shape_cast %5 : vector<1x8x1xf32> to vector<8x1xf32>
    %c3 = arith.constant 3 : index
    %c0_8 = arith.constant 0 : index
    %c0_9 = arith.constant 0 : index
    %7 = vector.load %arg4[%c3, %c0_8, %c0_9] : memref<5x8x1xf32, #tpu.memory_space<vmem>>, vector<1x8x1xf32>
    %8 = vector.shape_cast %7 : vector<1x8x1xf32> to vector<8x1xf32>
    %c4 = arith.constant 4 : index
    %c0_10 = arith.constant 0 : index
    %c0_11 = arith.constant 0 : index
    %9 = vector.load %arg4[%c4, %c0_10, %c0_11] : memref<5x8x1xf32, #tpu.memory_space<vmem>>, vector<1x8x1xf32>
    %10 = vector.shape_cast %9 : vector<1x8x1xf32> to vector<8x1xf32>
    %c0_12 = arith.constant 0 : index
    %c0_13 = arith.constant 0 : index
    %c0_14 = arith.constant 0 : index
    %11 = vector.load %arg2[%c0_12, %c0_13, %c0_14] : memref<2x4x18xf32, #tpu.memory_space<vmem>>, vector<1x4x18xf32>
    %12 = vector.shape_cast %11 : vector<1x4x18xf32> to vector<4x18xf32>
    %cst = arith.constant -3.000000e+00 : f32
    %cst_15 = arith.constant 3.000000e+00 : f32
    %13 = vector.broadcast %cst : f32 to vector<4x18xf32>
    %14 = arith.maximumf %13, %12 : vector<4x18xf32>
    %15 = vector.broadcast %cst_15 : f32 to vector<4x18xf32>
    %16 = arith.minimumf %15, %14 : vector<4x18xf32>
    %17 = vector.extract_strided_slice %16 {offsets = [0, 0], sizes = [4, 16], strides = [1, 1]} : vector<4x18xf32> to vector<4x16xf32>
    %18 = vector.extract_strided_slice %16 {offsets = [0, 1], sizes = [4, 16], strides = [1, 1]} : vector<4x18xf32> to vector<4x16xf32>
    %19 = vector.extract_strided_slice %16 {offsets = [0, 2], sizes = [4, 16], strides = [1, 1]} : vector<4x18xf32> to vector<4x16xf32>
    %20 = tpu.concatenate %17, %18, %19 in 0 : vector<4x16xf32>, vector<4x16xf32>, vector<4x16xf32> -> vector<12x16xf32>
    %cst_16 = arith.constant dense<0.000000e+00> : vector<40x16xf32>
    %21 = tpu.matmul %0, %20, %cst_16 {dimension_numbers = #tpu.dot_dimension_numbers<[1], [0], [0], [1], [0, 0, 1, 1], [], []>} : vector<40x12xf32>, vector<12x16xf32>, vector<40x16xf32> -> vector<40x16xf32>
    %cst_17 = arith.constant -8.000000e+00 : f32
    %cst_18 = arith.constant 8.000000e+00 : f32
    %22 = vector.broadcast %cst_17 : f32 to vector<40x16xf32>
    %23 = arith.maximumf %22, %21 : vector<40x16xf32>
    %24 = vector.broadcast %cst_18 : f32 to vector<40x16xf32>
    %25 = arith.minimumf %24, %23 : vector<40x16xf32>
    %26 = vector.extract_strided_slice %25 {offsets = [0, 0], sizes = [8, 16], strides = [1, 1]} : vector<40x16xf32> to vector<8x16xf32>
    %27 = vector.broadcast %2 : vector<8x1xf32> to vector<8x16xf32>
    %28 = arith.mulf %26, %27 : vector<8x16xf32>
    %29 = vector.extract_strided_slice %25 {offsets = [8, 0], sizes = [8, 16], strides = [1, 1]} : vector<40x16xf32> to vector<8x16xf32>
    %30 = math.sin %29 : vector<8x16xf32>
    %31 = vector.broadcast %4 : vector<8x1xf32> to vector<8x16xf32>
    %32 = arith.mulf %30, %31 : vector<8x16xf32>
    %33 = arith.addf %28, %32 : vector<8x16xf32>
    %34 = vector.extract_strided_slice %25 {offsets = [16, 0], sizes = [8, 16], strides = [1, 1]} : vector<40x16xf32> to vector<8x16xf32>
    %35 = math.cos %34 : vector<8x16xf32>
    %36 = vector.broadcast %6 : vector<8x1xf32> to vector<8x16xf32>
    %37 = arith.mulf %35, %36 : vector<8x16xf32>
    %38 = arith.addf %33, %37 : vector<8x16xf32>
    %39 = vector.extract_strided_slice %25 {offsets = [24, 0], sizes = [8, 16], strides = [1, 1]} : vector<40x16xf32> to vector<8x16xf32>
    %40 = math.tanh %39 : vector<8x16xf32>
    %41 = vector.broadcast %8 : vector<8x1xf32> to vector<8x16xf32>
    %42 = arith.mulf %40, %41 : vector<8x16xf32>
    %43 = arith.addf %38, %42 : vector<8x16xf32>
    %44 = vector.extract_strided_slice %25 {offsets = [32, 0], sizes = [8, 16], strides = [1, 1]} : vector<40x16xf32> to vector<8x16xf32>
    %cst_19 = arith.constant -5.000000e+00 : f32
    %cst_20 = arith.constant 5.000000e+00 : f32
    %45 = vector.broadcast %cst_19 : f32 to vector<8x16xf32>
    %46 = arith.maximumf %45, %44 : vector<8x16xf32>
    %47 = vector.broadcast %cst_20 : f32 to vector<8x16xf32>
    %48 = arith.minimumf %47, %46 : vector<8x16xf32>
    %49 = math.exp %48 : vector<8x16xf32>
    %50 = vector.broadcast %10 : vector<8x1xf32> to vector<8x16xf32>
    %51 = arith.mulf %49, %50 : vector<8x16xf32>
    %52 = arith.addf %43, %51 : vector<8x16xf32>
    %cst_21 = arith.constant -5.000000e+00 : f32
    %cst_22 = arith.constant 5.000000e+00 : f32
    %53 = vector.broadcast %cst_21 : f32 to vector<8x16xf32>
    %54 = arith.maximumf %53, %52 : vector<8x16xf32>
    %55 = vector.broadcast %cst_22 : f32 to vector<8x16xf32>
    %56 = arith.minimumf %55, %54 : vector<8x16xf32>
    %c0_23 = arith.constant 0 : index
    %c0_24 = arith.constant 0 : index
    %c0_25 = arith.constant 0 : index
    %57 = vector.load %arg5[%c0_23, %c0_24, %c0_25] : memref<2x8x16xf32, #tpu.memory_space<vmem>>, vector<1x8x16xf32>
    %58 = vector.shape_cast %57 : vector<1x8x16xf32> to vector<8x16xf32>
    %59 = vector.shape_cast %56 : vector<8x16xf32> to vector<1x8x16xf32>
    tpu.vector_store %arg5[%c0_23, %c0_24, %c0_25], %59 {strides = array<i32>} : memref<2x8x16xf32, #tpu.memory_space<vmem>>, vector<1x8x16xf32>,
    %c1_26 = arith.constant 1 : index
    %c0_27 = arith.constant 0 : index
    %c0_28 = arith.constant 0 : index
    %60 = vector.load %arg2[%c1_26, %c0_27, %c0_28] : memref<2x4x18xf32, #tpu.memory_space<vmem>>, vector<1x4x18xf32>
    %61 = vector.shape_cast %60 : vector<1x4x18xf32> to vector<4x18xf32>
    %cst_29 = arith.constant -3.000000e+00 : f32
    %cst_30 = arith.constant 3.000000e+00 : f32
    %62 = vector.broadcast %cst_29 : f32 to vector<4x18xf32>
    %63 = arith.maximumf %62, %61 : vector<4x18xf32>
    %64 = vector.broadcast %cst_30 : f32 to vector<4x18xf32>
    %65 = arith.minimumf %64, %63 : vector<4x18xf32>
    %66 = vector.extract_strided_slice %65 {offsets = [0, 0], sizes = [4, 16], strides = [1, 1]} : vector<4x18xf32> to vector<4x16xf32>
    %67 = vector.extract_strided_slice %65 {offsets = [0, 1], sizes = [4, 16], strides = [1, 1]} : vector<4x18xf32> to vector<4x16xf32>
    %68 = vector.extract_strided_slice %65 {offsets = [0, 2], sizes = [4, 16], strides = [1, 1]} : vector<4x18xf32> to vector<4x16xf32>
    %69 = tpu.concatenate %66, %67, %68 in 0 : vector<4x16xf32>, vector<4x16xf32>, vector<4x16xf32> -> vector<12x16xf32>
    %cst_31 = arith.constant dense<0.000000e+00> : vector<40x16xf32>
    %70 = tpu.matmul %0, %69, %cst_31 {dimension_numbers = #tpu.dot_dimension_numbers<[1], [0], [0], [1], [0, 0, 1, 1], [], []>} : vector<40x12xf32>, vector<12x16xf32>, vector<40x16xf32> -> vector<40x16xf32>
    %cst_32 = arith.constant -8.000000e+00 : f32
    %cst_33 = arith.constant 8.000000e+00 : f32
    %71 = vector.broadcast %cst_32 : f32 to vector<40x16xf32>
    %72 = arith.maximumf %71, %70 : vector<40x16xf32>
    %73 = vector.broadcast %cst_33 : f32 to vector<40x16xf32>
    %74 = arith.minimumf %73, %72 : vector<40x16xf32>
    %75 = vector.extract_strided_slice %74 {offsets = [0, 0], sizes = [8, 16], strides = [1, 1]} : vector<40x16xf32> to vector<8x16xf32>
    %76 = vector.broadcast %2 : vector<8x1xf32> to vector<8x16xf32>
    %77 = arith.mulf %75, %76 : vector<8x16xf32>
    %78 = vector.extract_strided_slice %74 {offsets = [8, 0], sizes = [8, 16], strides = [1, 1]} : vector<40x16xf32> to vector<8x16xf32>
    %79 = math.sin %78 : vector<8x16xf32>
    %80 = vector.broadcast %4 : vector<8x1xf32> to vector<8x16xf32>
    %81 = arith.mulf %79, %80 : vector<8x16xf32>
    %82 = arith.addf %77, %81 : vector<8x16xf32>
    %83 = vector.extract_strided_slice %74 {offsets = [16, 0], sizes = [8, 16], strides = [1, 1]} : vector<40x16xf32> to vector<8x16xf32>
    %84 = math.cos %83 : vector<8x16xf32>
    %85 = vector.broadcast %6 : vector<8x1xf32> to vector<8x16xf32>
    %86 = arith.mulf %84, %85 : vector<8x16xf32>
    %87 = arith.addf %82, %86 : vector<8x16xf32>
    %88 = vector.extract_strided_slice %74 {offsets = [24, 0], sizes = [8, 16], strides = [1, 1]} : vector<40x16xf32> to vector<8x16xf32>
    %89 = math.tanh %88 : vector<8x16xf32>
    %90 = vector.broadcast %8 : vector<8x1xf32> to vector<8x16xf32>
    %91 = arith.mulf %89, %90 : vector<8x16xf32>
    %92 = arith.addf %87, %91 : vector<8x16xf32>
    %93 = vector.extract_strided_slice %74 {offsets = [32, 0], sizes = [8, 16], strides = [1, 1]} : vector<40x16xf32> to vector<8x16xf32>
    %cst_34 = arith.constant -5.000000e+00 : f32
    %cst_35 = arith.constant 5.000000e+00 : f32
    %94 = vector.broadcast %cst_34 : f32 to vector<8x16xf32>
    %95 = arith.maximumf %94, %93 : vector<8x16xf32>
    %96 = vector.broadcast %cst_35 : f32 to vector<8x16xf32>
    %97 = arith.minimumf %96, %95 : vector<8x16xf32>
    %98 = math.exp %97 : vector<8x16xf32>
    %99 = vector.broadcast %10 : vector<8x1xf32> to vector<8x16xf32>
    %100 = arith.mulf %98, %99 : vector<8x16xf32>
    %101 = arith.addf %92, %100 : vector<8x16xf32>
    %cst_36 = arith.constant -5.000000e+00 : f32
    %cst_37 = arith.constant 5.000000e+00 : f32
    %102 = vector.broadcast %cst_36 : f32 to vector<8x16xf32>
    %103 = arith.maximumf %102, %101 : vector<8x16xf32>
    %104 = vector.broadcast %cst_37 : f32 to vector<8x16xf32>
    %105 = arith.minimumf %104, %103 : vector<8x16xf32>
    %c1_38 = arith.constant 1 : index
    %c0_39 = arith.constant 0 : index
    %c0_40 = arith.constant 0 : index
    %106 = vector.load %arg5[%c1_38, %c0_39, %c0_40] : memref<2x8x16xf32, #tpu.memory_space<vmem>>, vector<1x8x16xf32>
    %107 = vector.shape_cast %106 : vector<1x8x16xf32> to vector<8x16xf32>
    %108 = vector.shape_cast %105 : vector<8x16xf32> to vector<1x8x16xf32>
    tpu.vector_store %arg5[%c1_38, %c0_39, %c0_40], %108 {strides = array<i32>} : memref<2x8x16xf32, #tpu.memory_space<vmem>>, vector<1x8x16xf32>,
    return
  }
  func.func @transform_0(%arg0: i32, %arg1: i32) -> (i32, i32, i32) {
    %c0_i32 = arith.constant 0 : i32
    %c0_i32_0 = arith.constant 0 : i32
    %c0_i32_1 = arith.constant 0 : i32
    return %arg0, %c0_i32, %c0_i32_0 : i32, i32, i32
  }
  func.func @transform_1(%arg0: i32, %arg1: i32) -> (i32, i32) {
    %c0_i32 = arith.constant 0 : i32
    %c0_i32_0 = arith.constant 0 : i32
    %c0_i32_1 = arith.constant 0 : i32
    return %c0_i32, %c0_i32_0 : i32, i32
  }
  func.func @transform_2(%arg0: i32, %arg1: i32) -> (i32, i32, i32) {
    %c0_i32 = arith.constant 0 : i32
    %c0_i32_0 = arith.constant 0 : i32
    %c0_i32_1 = arith.constant 0 : i32
    %c0_i32_2 = arith.constant 0 : i32
    return %c0_i32, %c0_i32_0, %c0_i32_1 : i32, i32, i32
  }
  func.func @transform_3(%arg0: i32, %arg1: i32) -> (i32, i32, i32) {
    %c0_i32 = arith.constant 0 : i32
    %c0_i32_0 = arith.constant 0 : i32
    return %arg0, %c0_i32, %arg1 : i32, i32, i32
  }
}

</mosaic_0001>

<bundles_post_ra>
// kernel: tpu_custom_call.1
= control target key start
LH: loop header
LB: loop body
LE: loop exit
PB: predicated region body
PF: predicated region fallthrough
CT: control target
= control target key end

     0   :  { %v943_v4 = vmov 0.0   ;;  %s1377_s0 = inlined_call_operand.vmem [shape: f32[2,4,18], index: 0, kind: input, shape index: {}]   ;;  %s1378_s1 = inlined_call_operand.vmem [shape: f32[40,12], index: 1, kind: input, shape index: {}]   ;;  %s1379_s2 = inlined_call_operand.vmem [shape: f32[5,8,1], index: 2, kind: input, shape index: {}]   ;;  %s1380_s3 = inlined_call_operand.hbm [shape: f32[2,8,16], index: 3, kind: output, shape index: {}]  }
   0x1   :  { %v29_v0 = vld [vmem:[%s1377_s0] sm:$0xf]  ;;  %v790_v1 = vld [vmem:[%s1377_s0 + $0x4] sm:$0xf]  ;;  %827 = vmatprep.subr.mxu0 %v943_v4  ;;  %846 = vmatprep.subr.mxu1 %v943_v4 }
   0x2   :  { %v768_v2 = vclamps-f32 %v29_v0, 3.0  ;;  %v791_v3 = vclamps-f32 %v790_v1, 3.0 }
   0x3   :  { %8 = vsyncpa [#allocation3], 0  ;;  %s944_s16 = smov 126   ;;  %vm945_vm0 = vmmov 0   ;;  %s946_s17 = smov 127   ;;  %v20_v7 = vld [vmem:[%s1379_s2] sm:$0xff] }
   0x4   :  { %37 = vrot.lane.b32.xlu0 %v768_v2, %s944_s16  ;;  %v33_v5 = vrot.slane %v768_v2, 4  ;;  %831 = vmatprep.mubr.msk.f32.mxu0 %vm945_vm0, %v943_v4  ;;  %v414_v6 = vrot.slane %v791_v3, 4  ;;  %v764_v8 = vld [vmem:[%s1379_s2 + $0x8] sm:$0xff]  ;;  %v947_v9 = vmov 0   ;;  %v765_v10 = vld [vmem:[%s1379_s2 + $0x10] sm:$0xff]  ;;  %v766_v11 = vld [vmem:[%s1379_s2 + $0x18] sm:$0xff] }
   0x5   :  { %850 = vmatprep.mubr.msk.f32.mxu1 %vm945_vm0, %v943_v4  ;;  %895 = vset.pattern.permute.xlu0 %v947_v9  ;;  %v767_v12 = vld [vmem:[%s1379_s2 + $0x20] sm:$0xff]  ;;  %vm39_vm1 = vcmask 1043456   ;;  %vm41_vm2 = vcmask 97280   ;;  %v16_v19 = vld [vmem:[%s1378_s1 + $0x8] sm:$0xff]  ;;  %v17_v21 = vld [vmem:[%s1378_s1 + $0x10] sm:$0xff] }
   0x6   :  { %34 = vrot.lane.b32.xlu1 %v33_v5, %s946_s17  ;;  %v15_v15 = vld [vmem:[%s1378_s1] sm:$0xff]  ;;  %v18_v22 = vld [vmem:[%s1378_s1 + $0x18] sm:$0xff] }
   0x7   :  { %896 = vset.pattern.permute.xlu1 %v947_v9  ;;  %v19_v23 = vld [vmem:[%s1378_s1 + $0x20] sm:$0xff]  ;;  %s954_s1 = smov [#allocation2]  }
   0x8   :  { %418 = vrot.lane.b32.xlu0 %v791_v3, %s944_s16  ;;  %s753_s9 = sshll.u32 %s954_s1, 4  ;;  %s754_s9 = int_to_ptr.vmem [resolvable:$true] %s753_s9 }
   0x9   :  { %s921_s10 = scalar_lea.vmem %s754_s9, 256  ;;  %p926_p1 = scmp.lt.s32.totalorder %s754_s9, %s754_s9 }
   0xa   :  { %415 = vrot.lane.b32.xlu1 %v414_v6, %s946_s17  ;;  %p922_p0 = scmp.ne.s32.totalorder %s754_s9, %s921_s10  ;;  %p927_p2 = scmp.lt.s32.totalorder %s921_s10, %s921_s10 }
   0xc   :  { %161 = vperm.xlu0 %895, %v20_v7   ;;  %p928_p3 = por %p927_p2, %p926_p1 }
   0xe   :  { %271 = vperm.xlu1 %896, %v764_v8   ;;  %v948_v8 = vmov 683565275   ;;  %p929_p4 = pnand %p928_p3, %p922_p0 }
  0x10   :  { %389 = vperm.xlu0 %895, %v766_v11  }
  0x12   :  { %381 = vperm.xlu1 %896, %v765_v10   ;;  %v949_v10 = vmov 2475754826  }
  0x16   :  { %400 = vperm.xlu1 %896, %v767_v12   ;;  %v950_v12 = vmov 2131351028  }
  0x76   :  { %v38_v13 = vpop.permute.xlu0 %37 }
  0x77   :  { %828 = vmatpush3.msk.msra.mxu0 %vm39_vm1, %v38_v13 }
  0x78   :  { %v35_v14 = vpop.permute.xlu1 %34  ;;  %829 = vmatprep.subr.mxu0 %v943_v4 }
  0x79   :  { %v40_v16 = vsel %vm39_vm1, %v768_v2, %v35_v14  ;;  %v951_v14 = vmov 2102212464  }
  0x7a   :  { %830 = vmatpush3.msra.mxu0 %v40_v16  ;;  %v419_v17 = vpop.permute.xlu0 %418  ;;  %v952_v16 = vmov 920167782  }
  0x7b   :  { %832 = vmatmul.mubr.msk.f32.vlgmr.msra.gmra.mxu0 %vm41_vm2, %v15_v15  ;;  %847 = vmatpush3.msk.msra.mxu1 %vm39_vm1, %v419_v17 }
  0x7c   :  { %v416_v18 = vpop.permute.xlu1 %415  ;;  %848 = vmatprep.subr.mxu1 %v943_v4  ;;  %834 = vmatprep.mubr.msk.f32.mxu0 %vm945_vm0, %v943_v4 }
  0x7d   :  { %v420_v20 = vsel %vm39_vm1, %v791_v3, %v416_v18 }
  0x7e   :  { %849 = vmatpush3.msra.mxu1 %v420_v20 }
  0x7f   :  { %835 = vmatmul.mubr.msk.f32.gmra.mxu0 %vm41_vm2, %v16_v19  ;;  %851 = vmatmul.mubr.msk.f32.vlgmr.msra.gmra.mxu1 %vm41_vm2, %v15_v15 }
  0x80   :  { %837 = vmatprep.mubr.msk.f32.mxu0 %vm945_vm0, %v943_v4  ;;  %853 = vmatprep.mubr.msk.f32.mxu1 %vm945_vm0, %v943_v4 }
  0x83   :  { %838 = vmatmul.mubr.msk.f32.gmra.mxu0 %vm41_vm2, %v17_v21  ;;  %854 = vmatmul.mubr.msk.f32.gmra.mxu1 %vm41_vm2, %v16_v19 }
  0x84   :  { %856 = vmatprep.mubr.msk.f32.mxu1 %vm945_vm0, %v943_v4  ;;  %840 = vmatprep.mubr.msk.f32.mxu0 %vm945_vm0, %v943_v4 }
  0x87   :  { %857 = vmatmul.mubr.msk.f32.gmra.mxu1 %vm41_vm2, %v17_v21  ;;  %841 = vmatmul.mubr.msk.f32.gmra.mxu0 %vm41_vm2, %v18_v22 }
  0x88   :  { %859 = vmatprep.mubr.msk.f32.mxu1 %vm945_vm0, %v943_v4  ;;  %843 = vmatprep.mubr.msk.f32.mxu0 %vm945_vm0, %v943_v4 }
  0x8b   :  { %860 = vmatmul.mubr.msk.f32.gmra.mxu1 %vm41_vm2, %v18_v22  ;;  %844 = vmatmul.mubr.msk.f32.gmra.mxu0 %vm41_vm2, %v19_v23 }
  0x8c   :  { %862 = vmatprep.mubr.msk.f32.mxu1 %vm945_vm0, %v943_v4 }
  0x8f   :  { %863 = vmatmul.mubr.msk.f32.gmra.mxu1 %vm41_vm2, %v19_v23 }
 0x13b   :  { %v1051_v24 = vpop.f32.mrf.mxu0 }
 0x13d   :  { %v833_v25 = vpop.f32.mrf.mxu0 }
 0x13f   :  { %v130_v26 = vpop.f32.mrf.mxu0  ;;  %v1053_v27 = vpop.f32.mrf.mxu1 }
 0x140   :  { %v1055_v28 = vclamps-f32 %v130_v26, 8.0 }
 0x141   :  { %v836_v29 = vpop.f32.mrf.mxu0  ;;  %v852_v30 = vpop.f32.mrf.mxu1 }
 0x142   :  { %v165_v31 = vand.u32 2147483647, %v1055_v28  ;;  %v168_v32 = vand.u32 2139095040, %v1055_v28  ;;  %v953_v29 = vmov 1326507024  }
 0x143   :  { %v135_v33 = vpop.f32.mrf.mxu0  ;;  %v494_v34 = vpop.f32.mrf.mxu1 }
 0x144   :  { %v169_v35 = vshrl.u32 %v168_v32, 23  ;;  %v172_v36 = vand.u32 8388607, %v165_v31  ;;  %v1061_v37 = vclamps-f32 %v135_v33, 8.0  ;;  %v1063_v38 = vclamps-f32 %v494_v34, 8.0 }
 0x145   :  { %v855_v39 = vpop.f32.mrf.mxu1  ;;  %v839_v40 = vpop.f32.mrf.mxu0 }
 0x146   :  { %v780_v41 = vadd.s32 4294967169, %v169_v35  ;;  %v276_v42 = vand.u32 2147483647, %v1061_v37  ;;  %v279_v43 = vand.u32 2139095040, %v1061_v37  ;;  %v524_v44 = vand.u32 2147483647, %v1063_v38 }
 0x147   :  { %v527_v45 = vand.u32 2139095040, %v1063_v38  ;;  %v499_v46 = vpop.f32.mrf.mxu1  ;;  %v1069_v47 = vpop.f32.mrf.mxu0  ;;  %v173_v48 = vor.u32 8388608, %v172_v36 }
 0x148   :  { %v175_v49 = vadd.s32 1, %v780_v41  ;;  %v283_v50 = vand.u32 8388607, %v276_v42  ;;  %v280_v51 = vshrl.u32 %v279_v43, 23  ;;  %v1075_v53 = vand.u32 8388607, %v524_v44 }
 0x149   :  { %v528_v52 = vshrl.u32 %v527_v45, 23  ;;  %v1077_v54 = vclamps-f32 %v499_v46, 8.0  ;;  %v858_v55 = vpop.f32.mrf.mxu1  ;;  %v842_v56 = vpop.f32.mrf.mxu0  ;;  %v1083_v0 = vshll.u32 %v173_v48, 8 }
 0x14a   :  { %vm176_vm3 = vcmp.gt.s32.totalorder %v175_v49, 0  ;;  %v784_v58 = vadd.s32 4294967169, %v280_v51  ;;  %v284_v59 = vor.u32 8388608, %v283_v50  ;;  %v532_v3 = vor.u32 8388608, %v1075_v53 }
 0x14b   :  { %v177_v57 = vsel %vm176_vm3, %v175_v49, 0  ;;  %v803_v60 = vadd.s32 4294967169, %v528_v52  ;;  %v1079_v61 = vpop.f32.mrf.mxu1  ;;  %v1081_v62 = vpop.f32.mrf.mxu0  ;;  %v630_v4 = vand.u32 2147483647, %v1077_v54 }
 0x14c   :  { %v179_v63 = vand.u32 31, %v177_v57  ;;  %v178_v1 = vshrl.u32 %v177_v57, 5  ;;  %v286_v2 = vadd.s32 1, %v784_v58  ;;  %v1092_v18 = vshll.u32 %v284_v59, 8 }
 0x14d   :  { %v861_v5 = vpop.f32.mrf.mxu1  ;;  %v845_v6 = vpop.f32.mrf.mxu0  ;;  %v1094_v19 = vadd.s32 1, %v803_v60 }
 0x14e   :  { %v180_v7 = vsub.s32 32, %v179_v63  ;;  %v182_v9 = vshll.u32 %v948_v8, %v179_v63  ;;  %v185_v11 = vshll.u32 %v949_v10, %v179_v63  ;;  %v188_v13 = vshll.u32 %v950_v12, %v179_v63 }
 0x14f   :  { %v191_v15 = vshll.u32 %v951_v14, %v179_v63  ;;  %v194_v17 = vshll.u32 %v952_v16, %v179_v63  ;;  %v1096_v20 = vpop.f32.mrf.mxu1  ;;  %vm197_vm4 = vcmp.lt.s32.totalorder %v178_v1, 1  ;;  %vm199_vm5 = vcmp.lt.s32.totalorder %v178_v1, 3 }
 0x150   :  { %v181_v21 = vshrl.u32 %v948_v8, %v180_v7  ;;  %v183_v22 = vshrl.u32 %v949_v10, %v180_v7  ;;  %v186_v23 = vshrl.u32 %v950_v12, %v180_v7  ;;  %v189_v25 = vshrl.u32 %v951_v14, %v180_v7 }
 0x151   :  { %v192_v26 = vshrl.u32 %v952_v16, %v180_v7  ;;  %v195_v30 = vshrl.u32 %v953_v29, %v180_v7  ;;  %v864_v32 = vpop.f32.mrf.mxu1  ;;  %vm287_vm6 = vcmp.gt.s32.totalorder %v286_v2, 0  ;;  %vm200_vm7 = vcmp.lt.s32.totalorder %v178_v1, 4 }
 0x152   :  { %v184_v33 = vor.u32 %v183_v22, %v182_v9  ;;  %v187_v34 = vor.u32 %v186_v23, %v185_v11  ;;  %v190_v35 = vor.u32 %v189_v25, %v188_v13  ;;  %v288_v40 = vsel %vm287_vm6, %v286_v2, 0 }
 0x153   :  { %v193_v36 = vor.u32 %v192_v26, %v191_v15  ;;  %v196_v39 = vor.u32 %v195_v30, %v194_v17  ;;  %vm198_vm8 = vcmp.lt.s32.totalorder %v178_v1, 2  ;;  %v289_v55 = vshrl.u32 %v288_v40, 5 }
 0x154   :  { %v201_v41 = vsel %vm197_vm4, %v181_v21, %v184_v33  ;;  %v202_v43 = vsel %vm200_vm7, %v190_v35, 2102212464  ;;  %v205_v45 = vsel %vm197_vm4, %v184_v33, %v187_v34  ;;  %v209_v46 = vsel %vm197_vm4, %v187_v34, %v190_v35 }
 0x155   :  { %v203_v48 = vsel %vm199_vm5, %v187_v34, %v202_v43  ;;  %v206_v49 = vsel %vm200_vm7, %v193_v36, 920167782  ;;  %v210_v50 = vsel %vm200_vm7, %v196_v39, 1326507024  ;;  %v290_v56 = vand.u32 31, %v288_v40 }
 0x156   :  { %v207_v51 = vsel %vm199_vm5, %v190_v35, %v206_v49  ;;  %v211_v52 = vsel %vm199_vm5, %v193_v36, %v210_v50  ;;  %v204_v57 = vsel %vm198_vm8, %v201_v41, %v203_v48  ;;  %vm535_vm9 = vcmp.gt.s32.totalorder %v1094_v19, 0 }
 0x157   :  { %v208_v58 = vsel %vm198_vm8, %v205_v45, %v207_v51  ;;  %v212_v59 = vsel %vm198_vm8, %v209_v46, %v211_v52  ;;  %v291_v6 = vsub.s32 32, %v290_v56  ;;  %v293_v1 = vshll.u32 %v948_v8, %v290_v56 }
 0x158   :  { %v1109_v60 = vmul.u32.u64.low %v1083_v0, %v212_v59  ;;  %v1110_v63 = vmul.u32.u64.high %v1083_v0, %v212_v59, %v1109_v60  ;;  %v1113_v2 = vmul.u32.u64.low %v1083_v0, %v208_v58  ;;  %v1114_v5 = vmul.u32.u64.high %v1083_v0, %v208_v58, %v1113_v2 }
 0x159   :  { %v296_v7 = vshll.u32 %v949_v10, %v290_v56  ;;  %v299_v9 = vshll.u32 %v950_v12, %v290_v56  ;;  %v220_v11 = vmul.u32 %v1083_v0, %v204_v57  ;;  %v302_v13 = vshll.u32 %v951_v14, %v290_v56 }
 0x15a   :  { %v305_v15 = vshll.u32 %v952_v16, %v290_v56  ;;  %vm308_vm10 = vcmp.lt.s32.totalorder %v289_v55, 1  ;;  %v292_v17 = vshrl.u32 %v948_v8, %v291_v6  ;;  %v294_v21 = vshrl.u32 %v949_v10, %v291_v6 }
 0x15b   :  { %v297_v22 = vshrl.u32 %v950_v12, %v291_v6  ;;  %v300_v23 = vshrl.u32 %v951_v14, %v291_v6  ;;  %vm222_vm11 = vc.u32 %v1110_v63, %v1113_v2  ;;  %v223_v25 = vadd.s32 1, %v1114_v5 }
 0x15c   :  { %v303_v0 = vshrl.u32 %v952_v16, %v291_v6  ;;  %vm310_vm12 = vcmp.lt.s32.totalorder %v289_v55, 3  ;;  %v295_v26 = vor.u32 %v294_v21, %v293_v1  ;;  %v306_v33 = vshrl.u32 %v953_v29, %v291_v6 }
 0x15d   :  { %v298_v30 = vor.u32 %v297_v22, %v296_v7  ;;  %v301_v32 = vor.u32 %v300_v23, %v299_v9  ;;  %v224_v34 = vsel %vm222_vm11, %v223_v25, %v1114_v5  ;;  %vm311_vm13 = vcmp.lt.s32.totalorder %v289_v55, 4 }
 0x15e   :  { %v304_v35 = vor.u32 %v303_v0, %v302_v13  ;;  %v536_v36 = vsel %vm535_vm9, %v1094_v19, 0  ;;  %v225_v39 = vadd.s32 %v224_v34, %v220_v11  ;;  %v307_v40 = vor.u32 %v306_v33, %v305_v15 }
 0x15f   :  { %v312_v41 = vsel %vm308_vm10, %v292_v17, %v295_v26  ;;  %v313_v43 = vsel %vm311_vm13, %v301_v32, 2102212464  ;;  %v316_v46 = vsel %vm308_vm10, %v295_v26, %v298_v30  ;;  %v320_v49 = vsel %vm308_vm10, %v298_v30, %v301_v32 }
 0x160   :  { %v314_v45 = vsel %vm310_vm12, %v298_v30, %v313_v43  ;;  %v317_v48 = vsel %vm311_vm13, %v304_v35, 920167782  ;;  %v226_v50 = vadd.s32 536870912, %v225_v39  ;;  %vm309_vm14 = vcmp.lt.s32.totalorder %v289_v55, 2 }
 0x161   :  { %v318_v51 = vsel %vm310_vm12, %v301_v32, %v317_v48  ;;  %v321_v52 = vsel %vm311_vm13, %v307_v40, 1326507024  ;;  %v315_v56 = vsel %vm309_vm14, %v312_v41, %v314_v45  ;;  %v1142_v58 = vshrl.u32 %v536_v36, 5 }
 0x162   :  { %v319_v57 = vsel %vm309_vm14, %v316_v46, %v318_v51  ;;  %v322_v19 = vsel %vm310_vm12, %v304_v35, %v321_v52  ;;  %v1144_v59 = vshrl.u32 %v226_v50, 30  ;;  %v538_v9 = vand.u32 31, %v536_v36 }
 0x163   :  { %v323_v60 = vsel %vm309_vm14, %v320_v49, %v322_v19  ;;  %v1147_v5 = vmul.u32.u64.low %v1092_v18, %v319_v57  ;;  %v1148_v6 = vmul.u32.u64.high %v1092_v18, %v319_v57, %v1147_v5  ;;  %v633_v11 = vand.u32 2139095040, %v1077_v54 }
 0x164   :  { %v1152_v1 = vmul.u32.u64.low %v1092_v18, %v323_v60  ;;  %v1153_v7 = vmul.u32.u64.high %v1092_v18, %v323_v60, %v1152_v1  ;;  %v228_v55 = vshll.u32 %v1144_v59, 30  ;;  %v331_v13 = vmul.u32 %v1092_v18, %v315_v56 }
 0x165   :  { %v1160_v15 = vshll.u32 %v532_v3, 8  ;;  %v1164_v17 = vand.u32 8388607, %v630_v4  ;;  %v539_v21 = vsub.s32 32, %v538_v9  ;;  %v541_v22 = vshll.u32 %v948_v8, %v538_v9 }
 0x166   :  { %vm556_vm15 = vcmp.lt.s32.totalorder %v1142_v58, 1  ;;  %vm559_vm0 = vcmp.lt.s32.totalorder %v1142_v58, 4  ;;  %v1169_v23 = vsub.s32 %v225_v39, %v228_v55  ;;  %v334_v25 = vadd.s32 1, %v1148_v6 }
 0x167   :  { %v544_v18 = vshll.u32 %v949_v10, %v538_v9  ;;  %v547_v53 = vshll.u32 %v950_v12, %v538_v9  ;;  %vm557_vm1 = vcmp.lt.s32.totalorder %v1142_v58, 2  ;;  %vm333_vm2 = vc.u32 %v1153_v7, %v1147_v5 }
 0x168   :  { %v542_v3 = vshrl.u32 %v949_v10, %v539_v21  ;;  %v550_v0 = vshll.u32 %v951_v14, %v538_v9  ;;  %v553_v26 = vshll.u32 %v952_v16, %v538_v9  ;;  %v231_v30 = vsub.s32 0, %v1169_v23 }
 0x169   :  { %v335_v32 = vsel %vm333_vm2, %v334_v25, %v1148_v6  ;;  %v545_v33 = vshrl.u32 %v950_v12, %v539_v21  ;;  %v548_v34 = vshrl.u32 %v951_v14, %v539_v21  ;;  %v551_v39 = vshrl.u32 %v952_v16, %v539_v21 }
 0x16a   :  { %v336_v35 = vadd.s32 %v335_v32, %v331_v13  ;;  %v543_v36 = vor.u32 %v542_v3, %v541_v22  ;;  %v554_v40 = vshrl.u32 %v953_v29, %v539_v21  ;;  %v781_v41 = vmin.u32 %v231_v30, %v1169_v23 }
 0x16b   :  { %v540_v43 = vshrl.u32 %v948_v8, %v539_v21  ;;  %v546_v45 = vor.u32 %v545_v33, %v544_v18  ;;  %v549_v46 = vor.u32 %v548_v34, %v547_v53  ;;  %v552_v49 = vor.u32 %v551_v39, %v550_v0 }
 0x16c   :  { %v337_v48 = vadd.s32 536870912, %v336_v35  ;;  %v555_v50 = vor.u32 %v554_v40, %v553_v26  ;;  %v634_v51 = vshrl.u32 %v633_v11, 23  ;;  %v233_v52 = vclz %v781_v41 }
 0x16d   :  { %v561_v56 = vsel %vm559_vm0, %v549_v46, 2102212464  ;;  %v564_v57 = vsel %vm556_vm15, %v543_v36, %v546_v45  ;;  %v568_v19 = vsel %vm556_vm15, %v546_v45, %v549_v46  ;;  %vm558_vm3 = vcmp.lt.s32.totalorder %v1142_v58, 3 }
 0x16e   :  { %v1194_v60 = vshrl.u32 %v337_v48, 30  ;;  %v565_v6 = vsel %vm559_vm0, %v552_v49, 920167782  ;;  %v569_v1 = vsel %vm559_vm0, %v555_v50, 1326507024  ;;  %v782_v9 = vadd.s32 4294967294, %v233_v52 }
 0x16f   :  { %v560_v11 = vsel %vm556_vm15, %v540_v43, %v543_v36  ;;  %v566_v55 = vsel %vm558_vm3, %v549_v46, %v565_v6  ;;  %v570_v13 = vsel %vm558_vm3, %v552_v49, %v569_v1  ;;  %v562_v22 = vsel %vm558_vm3, %v546_v45, %v561_v56 }
 0x170   :  { %v339_v21 = vshll.u32 %v1194_v60, 30  ;;  %v567_v25 = vsel %vm557_vm1, %v564_v57, %v566_v55  ;;  %v571_v18 = vsel %vm557_vm1, %v568_v19, %v570_v13  ;;  %vm783_vm4 = vcmp.lt.s32.totalorder %v782_v9, 0 }
 0x171   :  { %v1209_v53 = vmul.u32.u64.low %v1160_v15, %v571_v18  ;;  %v1210_v3 = vmul.u32.u64.high %v1160_v15, %v571_v18, %v1209_v53  ;;  %v807_v0 = vadd.s32 4294967169, %v634_v51  ;;  %v236_v26 = vsel %vm783_vm4, 0, %v782_v9 }
 0x172   :  { %v340_v30 = vsub.s32 %v336_v35, %v339_v21  ;;  %v1213_v32 = vmul.u32.u64.low %v1160_v15, %v567_v25  ;;  %v1214_v33 = vmul.u32.u64.high %v1160_v15, %v567_v25, %v1213_v32  ;;  %v221_v34 = vadd.s32 %v1113_v2, %v1110_v63 }
 0x173   :  { %v237_v36 = vsub.s32 32, %v236_v26  ;;  %v241_v39 = vsub.s32 4294967266, %v236_v26  ;;  %v563_v41 = vsel %vm557_vm1, %v560_v11, %v562_v22  ;;  %v640_v43 = vadd.s32 1, %v807_v0 }
 0x174   :  { %v342_v40 = vsub.s32 0, %v340_v30  ;;  %v238_v45 = vshll.u32 %v1169_v23, %v236_v26  ;;  %vm581_vm5 = vc.u32 %v1210_v3, %v1213_v32  ;;  %v582_v49 = vadd.s32 1, %v1214_v33 }
 0x175   :  { %v239_v46 = vshrl.u32 %v221_v34, %v237_v36  ;;  %v242_v48 = vadd.s32 127, %v241_v39  ;;  %v638_v50 = vor.u32 8388608, %v1164_v17  ;;  %vm641_vm6 = vcmp.gt.s32.totalorder %v640_v43, 0 }
 0x176   :  { %v785_v35 = vmin.u32 %v342_v40, %v340_v30  ;;  %v579_v51 = vmul.u32 %v1160_v15, %v563_v41  ;;  %v642_v58 = vsel %vm641_vm6, %v640_v43, 0  ;;  %v583_v56 = vsel %vm581_vm5, %v582_v49, %v1214_v33 }
 0x177   :  { %v240_v63 = vor.u32 %v239_v46, %v238_v45  ;;  %v243_v2 = vshll.u32 %v242_v48, 23  ;;  %v644_v23 = vand.u32 31, %v642_v58  ;;  %v332_v6 = vadd.s32 %v1147_v5, %v1153_v7 }
 0x178   :  { %v344_v52 = vclz %v785_v35  ;;  %v584_v19 = vadd.s32 %v583_v56, %v579_v51  ;;  %v1230_v11 = vshll.u32 %v638_v50, 8  ;;  %v643_v21 = vshrl.u32 %v642_v58, 5 }
 0x179   :  { %v244_v57 = vor.u32 4788187, %v243_v2  ;;  %v645_v9 = vsub.s32 32, %v644_v23  ;;  %v247_v55 = vcvt.s32.f32 %v240_v63  ;;  %v647_v15 = vshll.u32 %v948_v8, %v644_v23 }
 0x17a   :  { %v786_v1 = vadd.s32 4294967294, %v344_v52  ;;  %v585_v13 = vadd.s32 536870912, %v584_v19  ;;  %v650_v5 = vshll.u32 %v949_v10, %v644_v23  ;;  %v653_v33 = vshll.u32 %v950_v12, %v644_v23 }
 0x17b   :  { %v245_v17 = vand.u32 2147483647, %v244_v57  ;;  %v648_v22 = vshrl.u32 %v949_v10, %v645_v9  ;;  %v651_v25 = vshrl.u32 %v950_v12, %v645_v9  ;;  %v654_v7 = vshrl.u32 %v951_v14, %v645_v9 }
 0x17c   :  { %vm787_vm7 = vcmp.lt.s32.totalorder %v786_v1, 0  ;;  %v1235_v53 = vshrl.u32 %v585_v13, 30  ;;  %v656_v34 = vshll.u32 %v951_v14, %v644_v23  ;;  %vm167_vm8 = vcmp.lt.s32.totalorder %v1055_v28, 0 }
 0x17d   :  { %v347_v18 = vsel %vm787_vm7, 0, %v786_v1  ;;  %v248_v36 = vmul.f32 %v247_v55, %v245_v17  ;;  %v649_v41 = vor.u32 %v648_v22, %v647_v15  ;;  %v652_v46 = vor.u32 %v651_v25, %v650_v5 }
 0x17e   :  { %v348_v0 = vsub.s32 32, %v347_v18  ;;  %v352_v26 = vsub.s32 4294967266, %v347_v18  ;;  %v349_v39 = vshll.u32 %v340_v30, %v347_v18  ;;  %v587_v40 = vshll.u32 %v1235_v53, 30 }
 0x17f   :  { %v657_v10 = vshrl.u32 %v952_v16, %v645_v9  ;;  %v655_v35 = vor.u32 %v654_v7, %v653_v33  ;;  %v659_v49 = vshll.u32 %v952_v16, %v644_v23  ;;  %v660_v12 = vshrl.u32 %v953_v29, %v645_v9 }
 0x180   :  { %v350_v43 = vshrl.u32 %v332_v6, %v348_v0  ;;  %v353_v45 = vadd.s32 127, %v352_v26  ;;  %v588_v48 = vsub.s32 %v584_v19, %v587_v40  ;;  %v646_v30 = vshrl.u32 %v948_v8, %v645_v9 }
 0x181   :  { %v658_v63 = vor.u32 %v657_v10, %v656_v34  ;;  %v249_v2 = vxor.u32 2147483648, %v248_v36  ;;  %v661_v58 = vor.u32 %v660_v12, %v659_v49  ;;  %vm662_vm9 = vcmp.lt.s32.totalorder %v643_v21, 1 }
 0x182   :  { %v351_v50 = vor.u32 %v350_v43, %v349_v39  ;;  %v354_v14 = vshll.u32 %v353_v45, 23  ;;  %v590_v51 = vsub.s32 0, %v588_v48  ;;  %vm663_vm10 = vcmp.lt.s32.totalorder %v643_v21, 2  ;;  %v1312_v39 = vpop.permute.xlu0 %161 }
 0x183   :  { %vm664_vm11 = vcmp.lt.s32.totalorder %v643_v21, 3  ;;  %vm665_vm12 = vcmp.lt.s32.totalorder %v643_v21, 4  ;;  %v670_v19 = vsel %vm662_vm9, %v649_v41, %v652_v46  ;;  %v674_v1 = vsel %vm662_vm9, %v652_v46, %v655_v35 }
 0x184   :  { %v355_v52 = vor.u32 4788187, %v354_v14  ;;  %v804_v56 = vmin.u32 %v590_v51, %v588_v48  ;;  %v667_v57 = vsel %vm665_vm12, %v655_v35, 2102212464  ;;  %v671_v6 = vsel %vm665_vm12, %v658_v63, 920167782 }
 0x185   :  { %v358_v23 = vcvt.s32.f32 %v351_v50  ;;  %v672_v29 = vsel %vm664_vm11, %v655_v35, %v671_v6  ;;  %v666_v55 = vsel %vm662_vm9, %v646_v30, %v649_v41  ;;  %v675_v9 = vsel %vm665_vm12, %v661_v58, 1326507024 }
 0x186   :  { %v356_v16 = vand.u32 2147483647, %v355_v52  ;;  %v592_v17 = vclz %v804_v56  ;;  %v673_v8 = vsel %vm663_vm10, %v670_v19, %v672_v29  ;;  %v668_v13 = vsel %vm664_vm11, %v652_v46, %v667_v57 }
 0x187   :  { %v676_v15 = vsel %vm664_vm11, %v658_v63, %v675_v9  ;;  %v1249_v22 = vmul.u32.u64.low %v1230_v11, %v673_v8  ;;  %v1250_v25 = vmul.u32.u64.high %v1230_v11, %v673_v8, %v1249_v22  ;;  %v250_v18 = vsel %vm167_vm8, %v249_v2, %v248_v36 }
 0x188   :  { %v805_v5 = vadd.s32 4294967294, %v592_v17  ;;  %v677_v7 = vsel %vm663_vm10, %v674_v1, %v676_v15  ;;  %v359_v0 = vmul.f32 %v358_v23, %v356_v16  ;;  %v669_v34 = vsel %vm663_vm10, %v666_v55, %v668_v13 }
 0x189   :  { %v1257_v26 = vmul.u32.u64.low %v1230_v11, %v677_v7  ;;  %v1258_v33 = vmul.u32.u64.high %v1230_v11, %v677_v7, %v1257_v26  ;;  %vm1263_vm14 = vcmp.le.f32.partialorder %v165_v31, 0.7853982  ;;  %v688_v36 = vadd.s32 1, %v1250_v25 }
 0x18a   :  { %vm806_vm13 = vcmp.lt.s32.totalorder %v805_v5, 0  ;;  %v251_v41 = vsub.s32 4, %v1144_v59  ;;  %v253_v43 = vsel %vm1263_vm14, %v1055_v28, %v250_v18  ;;  %v580_v45 = vadd.s32 %v1213_v32, %v1210_v3 }
 0x18b   :  { %v595_v40 = vsel %vm806_vm13, 0, %v805_v5  ;;  %v360_v10 = vxor.u32 2147483648, %v359_v0  ;;  %v685_v31 = vmul.u32 %v1230_v11, %v669_v34  ;;  %vm687_vm15 = vc.u32 %v1258_v33, %v1249_v22 }
 0x18c   :  { %v596_v21 = vsub.s32 32, %v595_v40  ;;  %v600_v46 = vsub.s32 4294967266, %v595_v40  ;;  %v597_v35 = vshll.u32 %v588_v48, %v595_v40  ;;  %v689_v50 = vsel %vm687_vm15, %v688_v36, %v1250_v25 }
 0x18d   :  { %897 = vcosq.f32 %v253_v43  ;;  %vm278_vm0 = vcmp.lt.s32.totalorder %v1061_v37, 0  ;;  %v690_v14 = vadd.s32 %v689_v50, %v685_v31  ;;  %v252_v3 = vsel %vm167_vm8, %v251_v41, %v1144_v59 }
 0x18e   :  { %v598_v49 = vshrl.u32 %v580_v45, %v596_v21  ;;  %v601_v12 = vadd.s32 127, %v600_v46  ;;  %v779_v48 = vclamps-f32 %v1081_v62, 8.0  ;;  %899 = vsinq.f32 %v253_v43 }
 0x18f   :  { %v361_v11 = vsel %vm278_vm0, %v360_v10, %v359_v0  ;;  %v691_v63 = vadd.s32 536870912, %v690_v14  ;;  %v254_v51 = vsel %vm1263_vm14, 0, %v252_v3  ;;  %vm1291_vm1 = vcmp.le.f32.partialorder %v276_v42, 0.7853982 }
 0x190   :  { %v599_v32 = vor.u32 %v598_v49, %v597_v35  ;;  %v602_v30 = vshll.u32 %v601_v12, 23  ;;  %v788_v62 = vclamps-f32 %v779_v48, 5.0  ;;  %v364_v57 = vsel %vm1291_vm1, %v1061_v37, %v361_v11 }
 0x191   :  { %v1287_v58 = vshrl.u32 %v691_v63, 30  ;;  %v258_v6 = vadd.s32 3, %v254_v51  ;;  %v362_v16 = vsub.s32 4, %v1194_v60  ;;  %901 = vcosq.f32 %v364_v57 }
 0x192   :  { %v603_v2 = vor.u32 4788187, %v602_v30  ;;  %v606_v56 = vcvt.s32.f32 %v599_v32  ;;  %903 = vsinq.f32 %v364_v57  ;;  %v778_v42 = vclamps-f32 %v1069_v47, 8.0 }
 0x193   :  { %v693_v19 = vshll.u32 %v1287_v58, 30  ;;  %v396_v17 = vmul.f32 1.442695, %v788_v62  ;;  %v259_v55 = vand.u32 3, %v258_v6  ;;  %v363_v8 = vsel %vm278_vm0, %v362_v16, %v1194_v60  ;;  %v1310_v60 = vpop.permute.xlu1 %271 }
 0x194   :  { %v604_v59 = vand.u32 2147483647, %v603_v2  ;;  %905 = vtanh.f32 %v778_v42  ;;  %v365_v18 = vsel %vm1291_vm1, 0, %v363_v8  ;;  %vm526_vm2 = vcmp.lt.s32.totalorder %v1063_v38, 0 }
 0x195   :  { %v694_v29 = vsub.s32 %v690_v14, %v693_v19  ;;  %907 = vpow2.f32 %v396_v17  ;;  %vm264_vm3 = vcmp.eq.s32.totalorder %v259_v55, 2  ;;  %v775_v47 = vclamps-f32 %v1051_v24, 8.0 }
 0x196   :  { %v607_v23 = vmul.f32 %v606_v56, %v604_v59  ;;  %vm261_vm4 = vcmp.eq.s32.totalorder %v259_v55, 0  ;;  %v369_v36 = vand.u32 3, %v365_v18  ;;  %vm260_vm5 = vcmp.lt.s32.totalorder %v259_v55, 2  ;;  %v1332_v56 = vpop.permute.xlu0 %389 }
 0x197   :  { %v696_v1 = vsub.s32 0, %v694_v29  ;;  %vm1316_vm6 = vcmp.le.f32.partialorder %v524_v44, 0.7853982  ;;  %vm257_vm8 = vweird.f32 %v1055_v28  ;;  %v164_v46 = vmul.f32 %v775_v47, %v1312_v39  ;;  %v1328_v28 = vpop.permute.xlu1 %381 }
 0x198   :  { %v608_v9 = vxor.u32 2147483648, %v607_v23  ;;  %v686_v10 = vadd.s32 %v1249_v22, %v1258_v33  ;;  %v610_v50 = vsub.s32 4, %v1235_v53  ;;  %vm371_vm9 = vcmp.eq.s32.totalorder %v369_v36, 0 }
 0x199   :  { %v808_v15 = vmin.u32 %v696_v1, %v694_v29  ;;  %vm374_vm10 = vcmp.eq.s32.totalorder %v369_v36, 2  ;;  %vm370_vm11 = vcmp.lt.s32.totalorder %v369_v36, 2  ;;  %vm368_vm12 = vweird.f32 %v1061_v37 }
 0x19a   :  { %v898_v13 = vpop.eup %897  ;;  %v609_v0 = vsel %vm526_vm2, %v608_v9, %v607_v23  ;;  %v611_v16 = vsel %vm526_vm2, %v610_v50, %v1235_v53  ;;  %vm632_vm13 = vcmp.lt.s32.totalorder %v1077_v54, 0  ;;  %vm407_vm14 = vcmask 130048  }
 0x19b   :  { %v265_v25 = vxor.u32 2147483648, %v898_v13  ;;  %v900_v5 = vpop.eup %899  ;;  %v698_v7 = vclz %v808_v15  ;;  %v612_v45 = vsel %vm1316_vm6, %v1063_v38, %v609_v0  ;;  %v1338_v23 = vpop.permute.xlu1 %400  ;;  %v613_v9 = vsel %vm1316_vm6, 0, %v611_v16 }
 0x19c   :  { %v262_v26 = vxor.u32 2147483648, %v900_v5  ;;  %909 = vcosq.f32 %v612_v45  ;;  %v802_v15 = vclamps-f32 %v1096_v20, 8.0  ;;  %vm1350_vm15 = vcmp.le.f32.partialorder %v630_v4, 0.7853982 }
 0x19d   :  { %v266_v34 = vsel %vm264_vm3, %v265_v25, %v900_v5  ;;  %v809_v40 = vadd.s32 4294967294, %v698_v7  ;;  %911 = vsinq.f32 %v612_v45  ;;  %v617_v5 = vadd.s32 3, %v613_v9 }
 0x19e   :  { %v263_v41 = vsel %vm261_vm4, %v898_v13, %v262_v26  ;;  %v902_v21 = vpop.eup %901  ;;  %v811_v26 = vclamps-f32 %v802_v15, 5.0  ;;  %vm616_vm3 = vweird.f32 %v1063_v38 }
 0x19f   :  { %vm810_vm7 = vcmp.lt.s32.totalorder %v809_v40, 0  ;;  %v267_v24 = vsel %vm260_vm5, %v263_v41, %v266_v34  ;;  %v904_v44 = vpop.eup %903  ;;  %v375_v3 = vxor.u32 2147483648, %v902_v21  ;;  %v716_v34 = vsub.s32 4, %v1287_v58 }
 0x1a0   :  { %v701_v35 = vsel %vm810_vm7, 0, %v809_v40  ;;  %v268_v31 = vsel %vm257_vm8, nan, %v267_v24  ;;  %v372_v14 = vxor.u32 2147483648, %v904_v44  ;;  %v801_v40 = vclamps-f32 %v1079_v61, 8.0 }
 0x1a1   :  { %v702_v49 = vsub.s32 32, %v701_v35  ;;  %v706_v12 = vsub.s32 4294967266, %v701_v35  ;;  %v703_v32 = vshll.u32 %v694_v29, %v701_v35  ;;  %v274_v11 = vmul.f32 %v1310_v60, %v268_v31  ;;  %v906_v52 = vpop.eup %905 }
 0x1a2   :  { %v373_v22 = vsel %vm371_vm9, %v902_v21, %v372_v14  ;;  %v376_v33 = vsel %vm374_vm10, %v375_v3, %v904_v44  ;;  %v908_v6 = vpop.eup %907  ;;  %v392_v37 = vmul.f32 %v906_v52, %v1332_v56  ;;  %v618_v36 = vand.u32 3, %v617_v5 }
 0x1a3   :  { %v704_v30 = vshrl.u32 %v686_v10, %v702_v49  ;;  %v707_v48 = vadd.s32 127, %v706_v12  ;;  %v377_v51 = vsel %vm370_vm11, %v373_v22, %v376_v33  ;;  %v275_v57 = vadd.f32 %v274_v11, %v164_v46 }
 0x1a4   :  { %v378_v59 = vsel %vm368_vm12, nan, %v377_v51  ;;  %v403_v55 = vmul.f32 %v908_v6, %v1338_v23  ;;  %v740_v43 = vmul.f32 1.442695, %v811_v26  ;;  %v717_v24 = vsel %vm632_vm13, %v716_v34, %v1287_v58 }
 0x1a5   :  { %v705_v63 = vor.u32 %v704_v30, %v703_v32  ;;  %v708_v2 = vshll.u32 %v707_v48, 23  ;;  %v384_v19 = vmul.f32 %v1328_v28, %v378_v59  ;;  %vm620_vm0 = vcmp.eq.s32.totalorder %v618_v36, 0 }
 0x1a6   :  { %vm623_vm1 = vcmp.eq.s32.totalorder %v618_v36, 2  ;;  %v719_v46 = vsel %vm1350_vm15, 0, %v717_v24  ;;  %vm619_vm2 = vcmp.lt.s32.totalorder %v618_v36, 2  ;;  %v798_v49 = vclamps-f32 %v1053_v27, 8.0 }
 0x1a7   :  { %v709_v62 = vor.u32 4788187, %v708_v2  ;;  %v712_v42 = vcvt.s32.f32 %v705_v63  ;;  %v385_v1 = vadd.f32 %v384_v19, %v275_v57  ;;  %v723_v61 = vand.u32 3, %v719_v46 }
 0x1a8   :  { %v523_v32 = vmul.f32 %v798_v49, %v1312_v39  ;;  %vm722_vm7 = vweird.f32 %v1077_v54 }
 0x1a9   :  { %v710_v29 = vand.u32 2147483647, %v709_v62  ;;  %v393_v8 = vadd.f32 %v392_v37, %v385_v1  ;;  %v910_v53 = vpop.eup %909  ;;  %vm728_vm4 = vcmp.eq.s32.totalorder %v723_v61, 2  ;;  %vm725_vm5 = vcmp.eq.s32.totalorder %v723_v61, 0 }
 0x1aa   :  { %v912_v0 = vpop.eup %911  ;;  %v624_v41 = vxor.u32 2147483648, %v910_v53  ;;  %vm724_vm6 = vcmp.lt.s32.totalorder %v723_v61, 2 }
 0x1ab   :  { %v713_v17 = vmul.f32 %v712_v42, %v710_v29  ;;  %v404_v25 = vadd.f32 %v403_v55, %v393_v8  ;;  %v621_v4 = vxor.u32 2147483648, %v912_v0 }
 0x1ac   :  { %v625_v21 = vsel %vm623_vm1, %v624_v41, %v912_v0 }
 0x1ad   :  { %v714_v13 = vxor.u32 2147483648, %v713_v17  ;;  %v789_v47 = vclamps-f32 %v404_v25, 5.0  ;;  %v622_v45 = vsel %vm620_vm0, %v910_v53, %v621_v4 }
 0x1ae   :  { %v626_v10 = vsel %vm619_vm2, %v622_v45, %v625_v21 }
 0x1af   :  { %v715_v18 = vsel %vm632_vm13, %v714_v13, %v713_v17  ;;  %408 = vst.msk [vmem:[#allocation2] sm:$0xff] %vm407_vm14, %v789_v47  ;;  %v627_v31 = vsel %vm616_vm3, nan, %v626_v10 }
 0x1b0   :  { %v718_v20 = vsel %vm1350_vm15, %v1077_v54, %v715_v18  ;;  %v628_v50 = vmul.f32 %v627_v31, %v1310_v60 }
 0x1b1   :  { %913 = vcosq.f32 %v718_v20 }
 0x1b2   :  { %915 = vsinq.f32 %v718_v20  ;;  %v629_v11 = vadd.f32 %v628_v50, %v523_v32 }
 0x1b3   :  { %917 = vtanh.f32 %v801_v40 }
 0x1b4   :  { %919 = vpow2.f32 %v740_v43 }
 0x1be   :  { %v914_v35 = vpop.eup %913 }
 0x1bf   :  { %v916_v44 = vpop.eup %915  ;;  %v729_v58 = vxor.u32 2147483648, %v914_v35 }
 0x1c0   :  { %v726_v12 = vxor.u32 2147483648, %v916_v44  ;;  %v918_v38 = vpop.eup %917 }
 0x1c1   :  { %v730_v14 = vsel %vm728_vm4, %v729_v58, %v916_v44  ;;  %v920_v27 = vpop.eup %919  ;;  %v736_v63 = vmul.f32 %v918_v38, %v1332_v56 }
 0x1c2   :  { %v727_v3 = vsel %vm725_vm5, %v914_v35, %v726_v12  ;;  %v742_v60 = vmul.f32 %v920_v27, %v1338_v23 }
 0x1c3   :  { %v731_v30 = vsel %vm724_vm6, %v727_v3, %v730_v14 }
 0x1c4   :  { %v732_v48 = vsel %vm722_vm7, nan, %v731_v30 }
 0x1c5   :  { %v733_v22 = vmul.f32 %v732_v48, %v1328_v28 }
 0x1c7   :  { %v734_v33 = vadd.f32 %v733_v22, %v629_v11 }
 0x1c9   :  { %v737_v2 = vadd.f32 %v736_v63, %v734_v33 }
 0x1cb   :  { %v743_v51 = vadd.f32 %v742_v60, %v737_v2 }
 0x1cd   :  { %v812_v52 = vclamps-f32 %v743_v51, 5.0 }
 0x1cf   :  { %747 = vst.msk [vmem:[#allocation2 + $0x8] sm:$0xff] %vm407_vm14, %v812_v52 }
 0x1d0   :  { %932 = shalt.err (!%p929_p4)
}
 0x1d1   :  { %s955_s11 = smov 128   ;;  %s956_s12 = smov 8  }
 0x1d2   :  { %759 = dma.vmem_to_hbm [thread:$0]  %s754_s9, 256, %s1380_s3, [#allocation3], %s955_s11, %s955_s11, %s956_s12  }
 0x1d3   :  { %941 = dma.done.wait [#allocation3], 256  }
 0x1d4   :  { %942 = vsyncadd [#allocation3], 4294967040 }
 0x1d5   :  { %763 = vsyncpa [#allocation3], 1 }

</bundles_post_ra>
